<compile_context>
chip_gen: v7x
topology: tpu7x:2x2x1
jax: 0.10.0
libtpu: 0.0.40
codegen_flags: <defaults>
</compile_context>

<pallas_src>
import functools

import jax
import jax.numpy as jnp
from jax.experimental import pallas as pl
from jax.experimental.pallas import tpu as pltpu


def _round_up(x, m):
    return (x + m - 1) // m * m


def _conv_mxu_kernel(xcol_ref, w_ref, b_ref, o_ref):
    """One N-tile per grid step; channel contraction on the MXU.

    xcol_ref: (K_pad, tn)        VMEM  im2col tile (K = 9*Cin, zero padded)
    w_ref   : (Cout_pad, K_pad)  VMEM  weight matrix (resident across steps)
    b_ref   : (Cout_pad, 1)      VMEM  bias column
    o_ref   : (Cout_pad, tn)     VMEM  lane-dense output tile
    """
    acc = jnp.dot(w_ref[...], xcol_ref[...].astype(jnp.float32),
                  precision=jax.lax.Precision.HIGHEST,
                  preferred_element_type=jnp.float32)
    o_ref[...] = (acc + b_ref[...]).astype(o_ref.dtype)


def _conv_vpu_kernel(xcol_ref, w_ref, b_ref, o_ref, *, k_real, cout_pad, tn):
    """Outer-product formulation for small channel counts (MXU <4% utilized).

    Per real K row:  acc += w[:, k] (outer) xcol[k, :]   -- 2 VALU ops per k,
    Cout vectorized on sublanes, spatial+batch lane-dense on the lane axis.
    """
    w = w_ref[...].astype(jnp.float32)                 # hoisted: loaded once
    acc = jnp.zeros((cout_pad, tn), jnp.float32)
    for k in range(k_real):                            # K = 9*Cin, small & static
        xk = xcol_ref[k:k + 1, :].astype(jnp.float32)  # (1, tn) lane-dense row
        acc = acc + w[:, k:k + 1] * xk                 # (Cout_pad,1)*(1,tn)
    o_ref[...] = (acc + b_ref[...]).astype(o_ref.dtype)


def downsample_pallas(x, t, params, *, mxu_min_channels=9, tile_n=512):
    """Conv2d(C, C, 3, stride=2, padding=1)(x); `t` is unused (as in PyTorch)."""
    del t  # the PyTorch forward ignores it

    w = params["weight"]                      # (Cout, Cin, 3, 3)
    b = params["bias"]                        # (Cout,)
    B, C, H, W = x.shape
    Cout = w.shape[0]

    Ho = (H - 1) // 2 + 1                     # (H + 2*1 - 3)//2 + 1
    Wo = (W - 1) // 2 + 1

    use_mxu = C >= mxu_min_channels

    # --- wrapper-side layout plumbing only (slices / reshapes, no arithmetic) ---
    # im2col: tap (kh, kw) is the stride-2 window of the padded input.
    x_pad = jnp.pad(x, ((0, 0), (0, 0), (1, 1), (1, 1)))
    taps = []
    for kh in range(3):
        for kw in range(3):
            taps.append(x_pad[:, :, kh:kh + 2 * Ho - 1:2, kw:kw + 2 * Wo - 1:2])
    xcol = jnp.stack(taps, axis=0)            # (9, B, C, Ho, Wo)
    xcol = xcol.transpose(0, 2, 1, 3, 4)      # (9, C, B, Ho, Wo): K = (tap, ci)
    K = 9 * C
    N = B * Ho * Wo                           # batch packed onto the lane axis
    xcol = xcol.reshape(K, N)

    # Pad to friendly extents (zero rows/cols contribute nothing to the conv).
    k_align = 128 if use_mxu else 8
    K_pad = _round_up(K, k_align)
    Cout_pad = _round_up(Cout, 8)
    tn = tile_n if N >= tile_n else _round_up(N, 128)   # lane-dense tiles
    N_pad = _round_up(N, tn)

    xcol = jnp.pad(xcol, ((0, K_pad - K), (0, N_pad - N)))
    w_mat = jnp.pad(
        w.transpose(0, 2, 3, 1).reshape(Cout, K).astype(jnp.float32),
        ((0, Cout_pad - Cout), (0, K_pad - K)))          # col = (kh*3+kw)*C + ci
    b_col = jnp.pad(b.astype(jnp.float32),
                    (0, Cout_pad - Cout)).reshape(Cout_pad, 1)

    if use_mxu:
        kernel = _conv_mxu_kernel
    else:
        kernel = functools.partial(_conv_vpu_kernel,
                                   k_real=K, cout_pad=Cout_pad, tn=tn)

    out_mat = pl.pallas_call(
        kernel,
        out_shape=jax.ShapeDtypeStruct((Cout_pad, N_pad), x.dtype),
        grid_spec=pltpu.PrefetchScalarGridSpec(
            num_scalar_prefetch=0,
            grid=(N_pad // tn,),
            in_specs=[
                # im2col tile: pipelined over the spatial/batch (lane) axis
                pl.BlockSpec((K_pad, tn), lambda n: (0, n)),
                # small weight matrix + bias: resident (constant block index)
                pl.BlockSpec((Cout_pad, K_pad), lambda n: (0, 0)),
                pl.BlockSpec((Cout_pad, 1), lambda n: (0, 0)),
            ],
            out_specs=pl.BlockSpec((Cout_pad, tn), lambda n: (0, n)),
        ),
        compiler_params=pltpu.CompilerParams(
            dimension_semantics=("parallel",)),
    )(xcol, w_mat, b_col)

    # Layout plumbing back to NCHW.
    out = out_mat[:Cout, :N].reshape(Cout, B, Ho, Wo).transpose(1, 0, 2, 3)
    return out


def downsample_ref(x, t, params):
    """Pure-JAX reference mirroring the PyTorch forward exactly."""
    del t
    out = jax.lax.conv_general_dilated(
        x, params["weight"],
        window_strides=(2, 2),
        padding=((1, 1), (1, 1)),
        dimension_numbers=("NCHW", "OIHW", "NCHW"),
        precision=jax.lax.Precision.HIGHEST)
    return out + params["bias"][None, :, None, None]


if __name__ == "__main__":
    # Small shapes consistent with the module's forward.
    B, C, H, W = 2, 4, 16, 16

    key = jax.random.PRNGKey(0)
    kx, kt, kw, kb = jax.random.split(key, 4)

    x = jax.random.normal(kx, (B, C, H, W), dtype=jnp.float32)
    t = jax.random.normal(kt, (B,), dtype=jnp.float32)   # ignored by forward()

    params = {
        "weight": jax.random.normal(kw, (C, C, 3, 3), dtype=jnp.float32) * 0.1,
        "bias": jax.random.normal(kb, (C,), dtype=jnp.float32) * 0.1,
    }

    out = jax.block_until_ready(downsample_pallas(x, t, params))
    ref = jax.block_until_ready(downsample_ref(x, t, params))

    assert out.shape == (B, C, H // 2, W // 2), out.shape
    assert jnp.allclose(out, ref, rtol=1e-4, atol=1e-4), (
        float(jnp.max(jnp.abs(out - ref))))

    # Smoke-test the im2col + MXU path used for larger channel counts.
    C2 = 16
    k2x, k2w, k2b = jax.random.split(jax.random.PRNGKey(1), 3)
    x2 = jax.random.normal(k2x, (B, C2, H, W), dtype=jnp.float32)
    p2 = {
        "weight": jax.random.normal(k2w, (C2, C2, 3, 3), dtype=jnp.float32) * 0.1,
        "bias": jax.random.normal(k2b, (C2,), dtype=jnp.float32) * 0.1,
    }
    out2 = jax.block_until_ready(downsample_pallas(x2, t, p2))
    ref2 = jax.block_until_ready(downsample_ref(x2, t, p2))
    assert out2.shape == (B, C2, H // 2, W // 2), out2.shape
    # Loose tolerance: smoke test of the MXU path (f32 HIGHEST; expected ~1e-6).
    assert jnp.allclose(out2, ref2, rtol=1e-2, atol=1e-2), (
        float(jnp.max(jnp.abs(out2 - ref2))))

    print("KERNEL_OK")
</pallas_src>

<mosaic_0001>
module attributes {stable_mosaic.version = 11 : i64} {
  func.func @_conv_vpu_kernel(%arg0: i32, %arg1: memref<40x128xf32, #tpu.memory_space<vmem>>, %arg2: memref<8x40xf32, #tpu.memory_space<vmem>>, %arg3: memref<8x1xf32, #tpu.memory_space<vmem>>, %arg4: memref<8x128xf32, #tpu.memory_space<vmem>>) attributes {dimension_semantics = [#tpu.dimension_semantics<parallel>], iteration_bounds = array<i64: 1>, scalar_prefetch = 0 : i64, scratch_operands = 0 : i64, tpu.core_type = #tpu.core_type<tc>, window_params = [{transform_indices = @transform_0, window_bounds = array<i64: 40, 128>}, {pipeline_mode = #tpu.pipeline_mode<synchronous>, transform_indices = @transform_1, window_bounds = array<i64: 8, 40>}, {pipeline_mode = #tpu.pipeline_mode<synchronous>, transform_indices = @transform_2, window_bounds = array<i64: 8, 1>}, {transform_indices = @transform_3, window_bounds = array<i64: 8, 128>}]} {
    %c0 = arith.constant 0 : index
    %c0_0 = arith.constant 0 : index
    %0 = vector.load %arg2[%c0, %c0_0] : memref<8x40xf32, #tpu.memory_space<vmem>>, vector<8x40xf32>
    %cst = arith.constant 0.000000e+00 : f32
    %1 = vector.broadcast %cst : f32 to vector<8x128xf32>
    %c0_1 = arith.constant 0 : index
    %c0_2 = arith.constant 0 : index
    %2 = vector.load %arg1[%c0_1, %c0_2] : memref<40x128xf32, #tpu.memory_space<vmem>>, vector<1x128xf32>
    %3 = vector.extract_strided_slice %0 {offsets = [0, 0], sizes = [8, 1], strides = [1, 1]} : vector<8x40xf32> to vector<8x1xf32>
    %4 = vector.broadcast %3 : vector<8x1xf32> to vector<8x128xf32>
    %5 = vector.broadcast %2 : vector<1x128xf32> to vector<8x128xf32>
    %6 = arith.mulf %4, %5 : vector<8x128xf32>
    %7 = arith.addf %1, %6 : vector<8x128xf32>
    %c1 = arith.constant 1 : index
    %c0_3 = arith.constant 0 : index
    %8 = vector.load %arg1[%c1, %c0_3] : memref<40x128xf32, #tpu.memory_space<vmem>>, vector<1x128xf32>
    %9 = vector.extract_strided_slice %0 {offsets = [0, 1], sizes = [8, 1], strides = [1, 1]} : vector<8x40xf32> to vector<8x1xf32>
    %10 = vector.broadcast %9 : vector<8x1xf32> to vector<8x128xf32>
    %11 = vector.broadcast %8 : vector<1x128xf32> to vector<8x128xf32>
    %12 = arith.mulf %10, %11 : vector<8x128xf32>
    %13 = arith.addf %7, %12 : vector<8x128xf32>
    %c2 = arith.constant 2 : index
    %c0_4 = arith.constant 0 : index
    %14 = vector.load %arg1[%c2, %c0_4] : memref<40x128xf32, #tpu.memory_space<vmem>>, vector<1x128xf32>
    %15 = vector.extract_strided_slice %0 {offsets = [0, 2], sizes = [8, 1], strides = [1, 1]} : vector<8x40xf32> to vector<8x1xf32>
    %16 = vector.broadcast %15 : vector<8x1xf32> to vector<8x128xf32>
    %17 = vector.broadcast %14 : vector<1x128xf32> to vector<8x128xf32>
    %18 = arith.mulf %16, %17 : vector<8x128xf32>
    %19 = arith.addf %13, %18 : vector<8x128xf32>
    %c3 = arith.constant 3 : index
    %c0_5 = arith.constant 0 : index
    %20 = vector.load %arg1[%c3, %c0_5] : memref<40x128xf32, #tpu.memory_space<vmem>>, vector<1x128xf32>
    %21 = vector.extract_strided_slice %0 {offsets = [0, 3], sizes = [8, 1], strides = [1, 1]} : vector<8x40xf32> to vector<8x1xf32>
    %22 = vector.broadcast %21 : vector<8x1xf32> to vector<8x128xf32>
    %23 = vector.broadcast %20 : vector<1x128xf32> to vector<8x128xf32>
    %24 = arith.mulf %22, %23 : vector<8x128xf32>
    %25 = arith.addf %19, %24 : vector<8x128xf32>
    %c4 = arith.constant 4 : index
    %c0_6 = arith.constant 0 : index
    %26 = vector.load %arg1[%c4, %c0_6] : memref<40x128xf32, #tpu.memory_space<vmem>>, vector<1x128xf32>
    %27 = vector.extract_strided_slice %0 {offsets = [0, 4], sizes = [8, 1], strides = [1, 1]} : vector<8x40xf32> to vector<8x1xf32>
    %28 = vector.broadcast %27 : vector<8x1xf32> to vector<8x128xf32>
    %29 = vector.broadcast %26 : vector<1x128xf32> to vector<8x128xf32>
    %30 = arith.mulf %28, %29 : vector<8x128xf32>
    %31 = arith.addf %25, %30 : vector<8x128xf32>
    %c5 = arith.constant 5 : index
    %c0_7 = arith.constant 0 : index
    %32 = vector.load %arg1[%c5, %c0_7] : memref<40x128xf32, #tpu.memory_space<vmem>>, vector<1x128xf32>
    %33 = vector.extract_strided_slice %0 {offsets = [0, 5], sizes = [8, 1], strides = [1, 1]} : vector<8x40xf32> to vector<8x1xf32>
    %34 = vector.broadcast %33 : vector<8x1xf32> to vector<8x128xf32>
    %35 = vector.broadcast %32 : vector<1x128xf32> to vector<8x128xf32>
    %36 = arith.mulf %34, %35 : vector<8x128xf32>
    %37 = arith.addf %31, %36 : vector<8x128xf32>
    %c6 = arith.constant 6 : index
    %c0_8 = arith.constant 0 : index
    %38 = vector.load %arg1[%c6, %c0_8] : memref<40x128xf32, #tpu.memory_space<vmem>>, vector<1x128xf32>
    %39 = vector.extract_strided_slice %0 {offsets = [0, 6], sizes = [8, 1], strides = [1, 1]} : vector<8x40xf32> to vector<8x1xf32>
    %40 = vector.broadcast %39 : vector<8x1xf32> to vector<8x128xf32>
    %41 = vector.broadcast %38 : vector<1x128xf32> to vector<8x128xf32>
    %42 = arith.mulf %40, %41 : vector<8x128xf32>
    %43 = arith.addf %37, %42 : vector<8x128xf32>
    %c7 = arith.constant 7 : index
    %c0_9 = arith.constant 0 : index
    %44 = vector.load %arg1[%c7, %c0_9] : memref<40x128xf32, #tpu.memory_space<vmem>>, vector<1x128xf32>
    %45 = vector.extract_strided_slice %0 {offsets = [0, 7], sizes = [8, 1], strides = [1, 1]} : vector<8x40xf32> to vector<8x1xf32>
    %46 = vector.broadcast %45 : vector<8x1xf32> to vector<8x128xf32>
    %47 = vector.broadcast %44 : vector<1x128xf32> to vector<8x128xf32>
    %48 = arith.mulf %46, %47 : vector<8x128xf32>
    %49 = arith.addf %43, %48 : vector<8x128xf32>
    %c8 = arith.constant 8 : index
    %c0_10 = arith.constant 0 : index
    %50 = vector.load %arg1[%c8, %c0_10] : memref<40x128xf32, #tpu.memory_space<vmem>>, vector<1x128xf32>
    %51 = vector.extract_strided_slice %0 {offsets = [0, 8], sizes = [8, 1], strides = [1, 1]} : vector<8x40xf32> to vector<8x1xf32>
    %52 = vector.broadcast %51 : vector<8x1xf32> to vector<8x128xf32>
    %53 = vector.broadcast %50 : vector<1x128xf32> to vector<8x128xf32>
    %54 = arith.mulf %52, %53 : vector<8x128xf32>
    %55 = arith.addf %49, %54 : vector<8x128xf32>
    %c9 = arith.constant 9 : index
    %c0_11 = arith.constant 0 : index
    %56 = vector.load %arg1[%c9, %c0_11] : memref<40x128xf32, #tpu.memory_space<vmem>>, vector<1x128xf32>
    %57 = vector.extract_strided_slice %0 {offsets = [0, 9], sizes = [8, 1], strides = [1, 1]} : vector<8x40xf32> to vector<8x1xf32>
    %58 = vector.broadcast %57 : vector<8x1xf32> to vector<8x128xf32>
    %59 = vector.broadcast %56 : vector<1x128xf32> to vector<8x128xf32>
    %60 = arith.mulf %58, %59 : vector<8x128xf32>
    %61 = arith.addf %55, %60 : vector<8x128xf32>
    %c10 = arith.constant 10 : index
    %c0_12 = arith.constant 0 : index
    %62 = vector.load %arg1[%c10, %c0_12] : memref<40x128xf32, #tpu.memory_space<vmem>>, vector<1x128xf32>
    %63 = vector.extract_strided_slice %0 {offsets = [0, 10], sizes = [8, 1], strides = [1, 1]} : vector<8x40xf32> to vector<8x1xf32>
    %64 = vector.broadcast %63 : vector<8x1xf32> to vector<8x128xf32>
    %65 = vector.broadcast %62 : vector<1x128xf32> to vector<8x128xf32>
    %66 = arith.mulf %64, %65 : vector<8x128xf32>
    %67 = arith.addf %61, %66 : vector<8x128xf32>
    %c11 = arith.constant 11 : index
    %c0_13 = arith.constant 0 : index
    %68 = vector.load %arg1[%c11, %c0_13] : memref<40x128xf32, #tpu.memory_space<vmem>>, vector<1x128xf32>
    %69 = vector.extract_strided_slice %0 {offsets = [0, 11], sizes = [8, 1], strides = [1, 1]} : vector<8x40xf32> to vector<8x1xf32>
    %70 = vector.broadcast %69 : vector<8x1xf32> to vector<8x128xf32>
    %71 = vector.broadcast %68 : vector<1x128xf32> to vector<8x128xf32>
    %72 = arith.mulf %70, %71 : vector<8x128xf32>
    %73 = arith.addf %67, %72 : vector<8x128xf32>
    %c12 = arith.constant 12 : index
    %c0_14 = arith.constant 0 : index
    %74 = vector.load %arg1[%c12, %c0_14] : memref<40x128xf32, #tpu.memory_space<vmem>>, vector<1x128xf32>
    %75 = vector.extract_strided_slice %0 {offsets = [0, 12], sizes = [8, 1], strides = [1, 1]} : vector<8x40xf32> to vector<8x1xf32>
    %76 = vector.broadcast %75 : vector<8x1xf32> to vector<8x128xf32>
    %77 = vector.broadcast %74 : vector<1x128xf32> to vector<8x128xf32>
    %78 = arith.mulf %76, %77 : vector<8x128xf32>
    %79 = arith.addf %73, %78 : vector<8x128xf32>
    %c13 = arith.constant 13 : index
    %c0_15 = arith.constant 0 : index
    %80 = vector.load %arg1[%c13, %c0_15] : memref<40x128xf32, #tpu.memory_space<vmem>>, vector<1x128xf32>
    %81 = vector.extract_strided_slice %0 {offsets = [0, 13], sizes = [8, 1], strides = [1, 1]} : vector<8x40xf32> to vector<8x1xf32>
    %82 = vector.broadcast %81 : vector<8x1xf32> to vector<8x128xf32>
    %83 = vector.broadcast %80 : vector<1x128xf32> to vector<8x128xf32>
    %84 = arith.mulf %82, %83 : vector<8x128xf32>
    %85 = arith.addf %79, %84 : vector<8x128xf32>
    %c14 = arith.constant 14 : index
    %c0_16 = arith.constant 0 : index
    %86 = vector.load %arg1[%c14, %c0_16] : memref<40x128xf32, #tpu.memory_space<vmem>>, vector<1x128xf32>
    %87 = vector.extract_strided_slice %0 {offsets = [0, 14], sizes = [8, 1], strides = [1, 1]} : vector<8x40xf32> to vector<8x1xf32>
    %88 = vector.broadcast %87 : vector<8x1xf32> to vector<8x128xf32>
    %89 = vector.broadcast %86 : vector<1x128xf32> to vector<8x128xf32>
    %90 = arith.mulf %88, %89 : vector<8x128xf32>
    %91 = arith.addf %85, %90 : vector<8x128xf32>
    %c15 = arith.constant 15 : index
    %c0_17 = arith.constant 0 : index
    %92 = vector.load %arg1[%c15, %c0_17] : memref<40x128xf32, #tpu.memory_space<vmem>>, vector<1x128xf32>
    %93 = vector.extract_strided_slice %0 {offsets = [0, 15], sizes = [8, 1], strides = [1, 1]} : vector<8x40xf32> to vector<8x1xf32>
    %94 = vector.broadcast %93 : vector<8x1xf32> to vector<8x128xf32>
    %95 = vector.broadcast %92 : vector<1x128xf32> to vector<8x128xf32>
    %96 = arith.mulf %94, %95 : vector<8x128xf32>
    %97 = arith.addf %91, %96 : vector<8x128xf32>
    %c16 = arith.constant 16 : index
    %c0_18 = arith.constant 0 : index
    %98 = vector.load %arg1[%c16, %c0_18] : memref<40x128xf32, #tpu.memory_space<vmem>>, vector<1x128xf32>
    %99 = vector.extract_strided_slice %0 {offsets = [0, 16], sizes = [8, 1], strides = [1, 1]} : vector<8x40xf32> to vector<8x1xf32>
    %100 = vector.broadcast %99 : vector<8x1xf32> to vector<8x128xf32>
    %101 = vector.broadcast %98 : vector<1x128xf32> to vector<8x128xf32>
    %102 = arith.mulf %100, %101 : vector<8x128xf32>
    %103 = arith.addf %97, %102 : vector<8x128xf32>
    %c17 = arith.constant 17 : index
    %c0_19 = arith.constant 0 : index
    %104 = vector.load %arg1[%c17, %c0_19] : memref<40x128xf32, #tpu.memory_space<vmem>>, vector<1x128xf32>
    %105 = vector.extract_strided_slice %0 {offsets = [0, 17], sizes = [8, 1], strides = [1, 1]} : vector<8x40xf32> to vector<8x1xf32>
    %106 = vector.broadcast %105 : vector<8x1xf32> to vector<8x128xf32>
    %107 = vector.broadcast %104 : vector<1x128xf32> to vector<8x128xf32>
    %108 = arith.mulf %106, %107 : vector<8x128xf32>
    %109 = arith.addf %103, %108 : vector<8x128xf32>
    %c18 = arith.constant 18 : index
    %c0_20 = arith.constant 0 : index
    %110 = vector.load %arg1[%c18, %c0_20] : memref<40x128xf32, #tpu.memory_space<vmem>>, vector<1x128xf32>
    %111 = vector.extract_strided_slice %0 {offsets = [0, 18], sizes = [8, 1], strides = [1, 1]} : vector<8x40xf32> to vector<8x1xf32>
    %112 = vector.broadcast %111 : vector<8x1xf32> to vector<8x128xf32>
    %113 = vector.broadcast %110 : vector<1x128xf32> to vector<8x128xf32>
    %114 = arith.mulf %112, %113 : vector<8x128xf32>
    %115 = arith.addf %109, %114 : vector<8x128xf32>
    %c19 = arith.constant 19 : index
    %c0_21 = arith.constant 0 : index
    %116 = vector.load %arg1[%c19, %c0_21] : memref<40x128xf32, #tpu.memory_space<vmem>>, vector<1x128xf32>
    %117 = vector.extract_strided_slice %0 {offsets = [0, 19], sizes = [8, 1], strides = [1, 1]} : vector<8x40xf32> to vector<8x1xf32>
    %118 = vector.broadcast %117 : vector<8x1xf32> to vector<8x128xf32>
    %119 = vector.broadcast %116 : vector<1x128xf32> to vector<8x128xf32>
    %120 = arith.mulf %118, %119 : vector<8x128xf32>
    %121 = arith.addf %115, %120 : vector<8x128xf32>
    %c20 = arith.constant 20 : index
    %c0_22 = arith.constant 0 : index
    %122 = vector.load %arg1[%c20, %c0_22] : memref<40x128xf32, #tpu.memory_space<vmem>>, vector<1x128xf32>
    %123 = vector.extract_strided_slice %0 {offsets = [0, 20], sizes = [8, 1], strides = [1, 1]} : vector<8x40xf32> to vector<8x1xf32>
    %124 = vector.broadcast %123 : vector<8x1xf32> to vector<8x128xf32>
    %125 = vector.broadcast %122 : vector<1x128xf32> to vector<8x128xf32>
    %126 = arith.mulf %124, %125 : vector<8x128xf32>
    %127 = arith.addf %121, %126 : vector<8x128xf32>
    %c21 = arith.constant 21 : index
    %c0_23 = arith.constant 0 : index
    %128 = vector.load %arg1[%c21, %c0_23] : memref<40x128xf32, #tpu.memory_space<vmem>>, vector<1x128xf32>
    %129 = vector.extract_strided_slice %0 {offsets = [0, 21], sizes = [8, 1], strides = [1, 1]} : vector<8x40xf32> to vector<8x1xf32>
    %130 = vector.broadcast %129 : vector<8x1xf32> to vector<8x128xf32>
    %131 = vector.broadcast %128 : vector<1x128xf32> to vector<8x128xf32>
    %132 = arith.mulf %130, %131 : vector<8x128xf32>
    %133 = arith.addf %127, %132 : vector<8x128xf32>
    %c22 = arith.constant 22 : index
    %c0_24 = arith.constant 0 : index
    %134 = vector.load %arg1[%c22, %c0_24] : memref<40x128xf32, #tpu.memory_space<vmem>>, vector<1x128xf32>
    %135 = vector.extract_strided_slice %0 {offsets = [0, 22], sizes = [8, 1], strides = [1, 1]} : vector<8x40xf32> to vector<8x1xf32>
    %136 = vector.broadcast %135 : vector<8x1xf32> to vector<8x128xf32>
    %137 = vector.broadcast %134 : vector<1x128xf32> to vector<8x128xf32>
    %138 = arith.mulf %136, %137 : vector<8x128xf32>
    %139 = arith.addf %133, %138 : vector<8x128xf32>
    %c23 = arith.constant 23 : index
    %c0_25 = arith.constant 0 : index
    %140 = vector.load %arg1[%c23, %c0_25] : memref<40x128xf32, #tpu.memory_space<vmem>>, vector<1x128xf32>
    %141 = vector.extract_strided_slice %0 {offsets = [0, 23], sizes = [8, 1], strides = [1, 1]} : vector<8x40xf32> to vector<8x1xf32>
    %142 = vector.broadcast %141 : vector<8x1xf32> to vector<8x128xf32>
    %143 = vector.broadcast %140 : vector<1x128xf32> to vector<8x128xf32>
    %144 = arith.mulf %142, %143 : vector<8x128xf32>
    %145 = arith.addf %139, %144 : vector<8x128xf32>
    %c24 = arith.constant 24 : index
    %c0_26 = arith.constant 0 : index
    %146 = vector.load %arg1[%c24, %c0_26] : memref<40x128xf32, #tpu.memory_space<vmem>>, vector<1x128xf32>
    %147 = vector.extract_strided_slice %0 {offsets = [0, 24], sizes = [8, 1], strides = [1, 1]} : vector<8x40xf32> to vector<8x1xf32>
    %148 = vector.broadcast %147 : vector<8x1xf32> to vector<8x128xf32>
    %149 = vector.broadcast %146 : vector<1x128xf32> to vector<8x128xf32>
    %150 = arith.mulf %148, %149 : vector<8x128xf32>
    %151 = arith.addf %145, %150 : vector<8x128xf32>
    %c25 = arith.constant 25 : index
    %c0_27 = arith.constant 0 : index
    %152 = vector.load %arg1[%c25, %c0_27] : memref<40x128xf32, #tpu.memory_space<vmem>>, vector<1x128xf32>
    %153 = vector.extract_strided_slice %0 {offsets = [0, 25], sizes = [8, 1], strides = [1, 1]} : vector<8x40xf32> to vector<8x1xf32>
    %154 = vector.broadcast %153 : vector<8x1xf32> to vector<8x128xf32>
    %155 = vector.broadcast %152 : vector<1x128xf32> to vector<8x128xf32>
    %156 = arith.mulf %154, %155 : vector<8x128xf32>
    %157 = arith.addf %151, %156 : vector<8x128xf32>
    %c26 = arith.constant 26 : index
    %c0_28 = arith.constant 0 : index
    %158 = vector.load %arg1[%c26, %c0_28] : memref<40x128xf32, #tpu.memory_space<vmem>>, vector<1x128xf32>
    %159 = vector.extract_strided_slice %0 {offsets = [0, 26], sizes = [8, 1], strides = [1, 1]} : vector<8x40xf32> to vector<8x1xf32>
    %160 = vector.broadcast %159 : vector<8x1xf32> to vector<8x128xf32>
    %161 = vector.broadcast %158 : vector<1x128xf32> to vector<8x128xf32>
    %162 = arith.mulf %160, %161 : vector<8x128xf32>
    %163 = arith.addf %157, %162 : vector<8x128xf32>
    %c27 = arith.constant 27 : index
    %c0_29 = arith.constant 0 : index
    %164 = vector.load %arg1[%c27, %c0_29] : memref<40x128xf32, #tpu.memory_space<vmem>>, vector<1x128xf32>
    %165 = vector.extract_strided_slice %0 {offsets = [0, 27], sizes = [8, 1], strides = [1, 1]} : vector<8x40xf32> to vector<8x1xf32>
    %166 = vector.broadcast %165 : vector<8x1xf32> to vector<8x128xf32>
    %167 = vector.broadcast %164 : vector<1x128xf32> to vector<8x128xf32>
    %168 = arith.mulf %166, %167 : vector<8x128xf32>
    %169 = arith.addf %163, %168 : vector<8x128xf32>
    %c28 = arith.constant 28 : index
    %c0_30 = arith.constant 0 : index
    %170 = vector.load %arg1[%c28, %c0_30] : memref<40x128xf32, #tpu.memory_space<vmem>>, vector<1x128xf32>
    %171 = vector.extract_strided_slice %0 {offsets = [0, 28], sizes = [8, 1], strides = [1, 1]} : vector<8x40xf32> to vector<8x1xf32>
    %172 = vector.broadcast %171 : vector<8x1xf32> to vector<8x128xf32>
    %173 = vector.broadcast %170 : vector<1x128xf32> to vector<8x128xf32>
    %174 = arith.mulf %172, %173 : vector<8x128xf32>
    %175 = arith.addf %169, %174 : vector<8x128xf32>
    %c29 = arith.constant 29 : index
    %c0_31 = arith.constant 0 : index
    %176 = vector.load %arg1[%c29, %c0_31] : memref<40x128xf32, #tpu.memory_space<vmem>>, vector<1x128xf32>
    %177 = vector.extract_strided_slice %0 {offsets = [0, 29], sizes = [8, 1], strides = [1, 1]} : vector<8x40xf32> to vector<8x1xf32>
    %178 = vector.broadcast %177 : vector<8x1xf32> to vector<8x128xf32>
    %179 = vector.broadcast %176 : vector<1x128xf32> to vector<8x128xf32>
    %180 = arith.mulf %178, %179 : vector<8x128xf32>
    %181 = arith.addf %175, %180 : vector<8x128xf32>
    %c30 = arith.constant 30 : index
    %c0_32 = arith.constant 0 : index
    %182 = vector.load %arg1[%c30, %c0_32] : memref<40x128xf32, #tpu.memory_space<vmem>>, vector<1x128xf32>
    %183 = vector.extract_strided_slice %0 {offsets = [0, 30], sizes = [8, 1], strides = [1, 1]} : vector<8x40xf32> to vector<8x1xf32>
    %184 = vector.broadcast %183 : vector<8x1xf32> to vector<8x128xf32>
    %185 = vector.broadcast %182 : vector<1x128xf32> to vector<8x128xf32>
    %186 = arith.mulf %184, %185 : vector<8x128xf32>
    %187 = arith.addf %181, %186 : vector<8x128xf32>
    %c31 = arith.constant 31 : index
    %c0_33 = arith.constant 0 : index
    %188 = vector.load %arg1[%c31, %c0_33] : memref<40x128xf32, #tpu.memory_space<vmem>>, vector<1x128xf32>
    %189 = vector.extract_strided_slice %0 {offsets = [0, 31], sizes = [8, 1], strides = [1, 1]} : vector<8x40xf32> to vector<8x1xf32>
    %190 = vector.broadcast %189 : vector<8x1xf32> to vector<8x128xf32>
    %191 = vector.broadcast %188 : vector<1x128xf32> to vector<8x128xf32>
    %192 = arith.mulf %190, %191 : vector<8x128xf32>
    %193 = arith.addf %187, %192 : vector<8x128xf32>
    %c32 = arith.constant 32 : index
    %c0_34 = arith.constant 0 : index
    %194 = vector.load %arg1[%c32, %c0_34] : memref<40x128xf32, #tpu.memory_space<vmem>>, vector<1x128xf32>
    %195 = vector.extract_strided_slice %0 {offsets = [0, 32], sizes = [8, 1], strides = [1, 1]} : vector<8x40xf32> to vector<8x1xf32>
    %196 = vector.broadcast %195 : vector<8x1xf32> to vector<8x128xf32>
    %197 = vector.broadcast %194 : vector<1x128xf32> to vector<8x128xf32>
    %198 = arith.mulf %196, %197 : vector<8x128xf32>
    %199 = arith.addf %193, %198 : vector<8x128xf32>
    %c33 = arith.constant 33 : index
    %c0_35 = arith.constant 0 : index
    %200 = vector.load %arg1[%c33, %c0_35] : memref<40x128xf32, #tpu.memory_space<vmem>>, vector<1x128xf32>
    %201 = vector.extract_strided_slice %0 {offsets = [0, 33], sizes = [8, 1], strides = [1, 1]} : vector<8x40xf32> to vector<8x1xf32>
    %202 = vector.broadcast %201 : vector<8x1xf32> to vector<8x128xf32>
    %203 = vector.broadcast %200 : vector<1x128xf32> to vector<8x128xf32>
    %204 = arith.mulf %202, %203 : vector<8x128xf32>
    %205 = arith.addf %199, %204 : vector<8x128xf32>
    %c34 = arith.constant 34 : index
    %c0_36 = arith.constant 0 : index
    %206 = vector.load %arg1[%c34, %c0_36] : memref<40x128xf32, #tpu.memory_space<vmem>>, vector<1x128xf32>
    %207 = vector.extract_strided_slice %0 {offsets = [0, 34], sizes = [8, 1], strides = [1, 1]} : vector<8x40xf32> to vector<8x1xf32>
    %208 = vector.broadcast %207 : vector<8x1xf32> to vector<8x128xf32>
    %209 = vector.broadcast %206 : vector<1x128xf32> to vector<8x128xf32>
    %210 = arith.mulf %208, %209 : vector<8x128xf32>
    %211 = arith.addf %205, %210 : vector<8x128xf32>
    %c35 = arith.constant 35 : index
    %c0_37 = arith.constant 0 : index
    %212 = vector.load %arg1[%c35, %c0_37] : memref<40x128xf32, #tpu.memory_space<vmem>>, vector<1x128xf32>
    %213 = vector.extract_strided_slice %0 {offsets = [0, 35], sizes = [8, 1], strides = [1, 1]} : vector<8x40xf32> to vector<8x1xf32>
    %214 = vector.broadcast %213 : vector<8x1xf32> to vector<8x128xf32>
    %215 = vector.broadcast %212 : vector<1x128xf32> to vector<8x128xf32>
    %216 = arith.mulf %214, %215 : vector<8x128xf32>
    %217 = arith.addf %211, %216 : vector<8x128xf32>
    %c0_38 = arith.constant 0 : index
    %c0_39 = arith.constant 0 : index
    %218 = vector.load %arg3[%c0_38, %c0_39] : memref<8x1xf32, #tpu.memory_space<vmem>>, vector<8x1xf32>
    %219 = vector.broadcast %218 : vector<8x1xf32> to vector<8x128xf32>
    %220 = arith.addf %217, %219 : vector<8x128xf32>
    %c0_40 = arith.constant 0 : index
    %c0_41 = arith.constant 0 : index
    %221 = vector.load %arg4[%c0_40, %c0_41] : memref<8x128xf32, #tpu.memory_space<vmem>>, vector<8x128xf32>
    tpu.vector_store %arg4[%c0_40, %c0_41], %220 {strides = array<i32>} : memref<8x128xf32, #tpu.memory_space<vmem>>, vector<8x128xf32>,
    return
  }
  func.func @transform_0(%arg0: i32) -> (i32, i32) {
    %c0_i32 = arith.constant 0 : i32
    %c0_i32_0 = arith.constant 0 : i32
    return %c0_i32, %arg0 : i32, i32
  }
  func.func @transform_1(%arg0: i32) -> (i32, i32) {
    %c0_i32 = arith.constant 0 : i32
    %c0_i32_0 = arith.constant 0 : i32
    %c0_i32_1 = arith.constant 0 : i32
    return %c0_i32, %c0_i32_0 : i32, i32
  }
  func.func @transform_2(%arg0: i32) -> (i32, i32) {
    %c0_i32 = arith.constant 0 : i32
    %c0_i32_0 = arith.constant 0 : i32
    %c0_i32_1 = arith.constant 0 : i32
    return %c0_i32, %c0_i32_0 : i32, i32
  }
  func.func @transform_3(%arg0: i32) -> (i32, i32) {
    %c0_i32 = arith.constant 0 : i32
    %c0_i32_0 = arith.constant 0 : i32
    return %c0_i32, %arg0 : i32, i32
  }
}

</mosaic_0001>

<bundles_post_ra>
// kernel: tpu_custom_call.1
= control target key start
LH: loop header
LB: loop body
LE: loop exit
PB: predicated region body
PF: predicated region fallthrough
CT: control target
= control target key end

     0   :  { %8 = vsyncpa [#allocation3], 0  ;;  %s743_s0 = inlined_call_operand.hbm [shape: f32[40,128], index: 0, kind: input, shape index: {}]   ;;  %s744_s1 = inlined_call_operand.vmem [shape: f32[8,40], index: 1, kind: input, shape index: {}]   ;;  %s745_s2 = inlined_call_operand.vmem [shape: f32[8,1], index: 2, kind: input, shape index: {}]   ;;  %s746_s3 = inlined_call_operand.hbm [shape: f32[8,128], index: 3, kind: output, shape index: {}]  }
   0x1   :  { %9 = vsyncpa [#allocation4], 0  ;;  %s612_s12 = smov [#allocation2]   ;;  %s564_s16 = scalar_lea.hbm %s743_s0, 640 }
   0x2   :  { %s15_s13 = sshll.u32 %s612_s12, 4  ;;  %p565_p0 = scmp.ne.s32.totalorder %s743_s0, %s564_s16  ;;  %s16_s13 = int_to_ptr.vmem [resolvable:$true] %s15_s13 }
   0x3   :  { %p568_p1 = scmp.lt.u32.totalorder %s564_s16, %s743_s0 }
   0x5   :  { %p570_p2 = pnand %p568_p1, %p565_p0 }
   0x7   :  { %573 = shalt.err (!%p570_p2)
}
   0x8   :  { %s574_s21 = scalar_lea.vmem %s16_s13, 640  ;;  %p579_p4 = scmp.lt.s32.totalorder %s16_s13, %s16_s13 }
   0x9   :  { %p575_p3 = scmp.ne.s32.totalorder %s16_s13, %s574_s21  ;;  %p580_p5 = scmp.lt.s32.totalorder %s574_s21, %s574_s21 }
   0xb   :  { %p581_p6 = por %p580_p5, %p579_p4 }
   0xd   :  { %p582_p7 = pnand %p581_p6, %p575_p3 }
   0xf   :  { %585 = shalt.err (!%p582_p7)
}
  0x10   :  { %s613_s22 = smov 128   ;;  %s614_s23 = smov 8  }
  0x11   :  { %21 = dma.hbm_to_vmem [thread:$0]  %s743_s0, 640, %s16_s13, [#allocation3], %s613_s22, %s613_s22, %s614_s23  }
  0x12   :  { %608 = dma.done.wait [#allocation3], 640  }
  0x13   :  { %609 = vsyncadd [#allocation3], 4294966656  ;;  %v615_v0 = vmov 2   ;;  %v616_v1 = vmov 0   ;;  %v688_v2 = vld [vmem:[%s744_s1] sm:$0xff]  ;;  %v617_v3 = vmov 3  }
  0x14   :  { %528 = vset.pattern.permute.xlu1 %v615_v0  ;;  %526 = vset.pattern.permute.xlu0 %v616_v1  ;;  %v618_v4 = vmov 1   ;;  %v619_v5 = vmov 4   ;;  %v620_v6 = vmov 5   ;;  %v621_v7 = vmov 6   ;;  %v427_v37 = vld [vmem:[%s745_s2] sm:$0xff]  ;;  %s651_s2 = smov [#allocation5]  }
  0x15   :  { %55 = vperm.xlu1 %528, %v688_v2   ;;  %33 = vperm.xlu0 %526, %v688_v2   ;;  %v622_v8 = vmov 8   ;;  %v623_v9 = vmov 7   ;;  %v624_v10 = vmov 11   ;;  %v625_v11 = vmov 9   ;;  %v450_v40 = vld [vmem:[#allocation2] ss:$0 sm:$0xff] }
  0x16   :  { %v626_v12 = vmov 14   ;;  %v627_v13 = vmov 10   ;;  %v628_v14 = vmov 17   ;;  %v629_v15 = vmov 12   ;;  %v451_v41 = vld [vmem:[#allocation2 + $0x1] ss:$0 sm:$0xff] }
  0x17   :  { %v630_v16 = vmov 20   ;;  %v631_v17 = vmov 13   ;;  %v632_v18 = vmov 23   ;;  %v633_v19 = vmov 15   ;;  %v452_v43 = vld [vmem:[#allocation2 + $0x2] ss:$0 sm:$0xff] }
  0x18   :  { %v634_v20 = vmov 26   ;;  %v635_v21 = vmov 16   ;;  %v636_v22 = vmov 29   ;;  %v637_v23 = vmov 18   ;;  %v453_v47 = vld [vmem:[#allocation2 + $0x3] ss:$0 sm:$0xff] }
  0x19   :  { %529 = vset.pattern.permute.xlu1 %v617_v3  ;;  %527 = vset.pattern.permute.xlu0 %v618_v4  ;;  %v638_v24 = vmov 32   ;;  %v639_v25 = vmov 19   ;;  %v640_v26 = vmov 35   ;;  %v641_v27 = vmov 21   ;;  %v454_v50 = vld [vmem:[#allocation2 + $0x4] ss:$0 sm:$0xff] }
  0x1a   :  { %66 = vperm.xlu1 %529, %v688_v2   ;;  %44 = vperm.xlu0 %527, %v688_v2   ;;  %v642_v28 = vmov 22   ;;  %v643_v29 = vmov 24   ;;  %v644_v30 = vmov 25   ;;  %v645_v31 = vmov 27   ;;  %v455_v54 = vld [vmem:[#allocation2 + $0x5] ss:$0 sm:$0xff] }
  0x1b   :  { %v646_v32 = vmov 28   ;;  %v647_v33 = vmov 30   ;;  %v648_v34 = vmov 31   ;;  %v649_v35 = vmov 33   ;;  %v456_v60 = vld [vmem:[#allocation2 + $0x6] ss:$0 sm:$0xff] }
  0x1c   :  { %v650_v36 = vmov 34   ;;  %v457_v0 = vld [vmem:[#allocation2 + $0x7] ss:$0 sm:$0xff]  ;;  %s441_s28 = sshll.u32 %s651_s2, 4  ;;  %s442_s28 = int_to_ptr.vmem [resolvable:$true] %s441_s28 }
  0x1d   :  { %s586_s29 = scalar_lea.vmem %s442_s28, 128  ;;  %p591_p9 = scmp.lt.s32.totalorder %s442_s28, %s442_s28 }
  0x1e   :  { %530 = vset.pattern.permute.xlu1 %v619_v5  ;;  %531 = vset.pattern.permute.xlu0 %v620_v6  ;;  %p587_p8 = scmp.ne.s32.totalorder %s442_s28, %s586_s29  ;;  %p592_p10 = scmp.lt.s32.totalorder %s586_s29, %s586_s29 }
  0x1f   :  { %77 = vperm.xlu1 %530, %v688_v2   ;;  %88 = vperm.xlu0 %531, %v688_v2  }
  0x20   :  { %p593_p11 = por %p592_p10, %p591_p9 }
  0x22   :  { %p594_p12 = pnand %p593_p11, %p587_p8 }
  0x23   :  { %532 = vset.pattern.permute.xlu1 %v621_v7  ;;  %534 = vset.pattern.permute.xlu0 %v622_v8  ;;  %v459_v8 = vld [vmem:[#allocation2 + $0x9] ss:$0 sm:$0xff] }
  0x24   :  { %99 = vperm.xlu1 %532, %v688_v2   ;;  %121 = vperm.xlu0 %534, %v688_v2  }
  0x28   :  { %533 = vset.pattern.permute.xlu1 %v623_v9  ;;  %537 = vset.pattern.permute.xlu0 %v624_v10 }
  0x29   :  { %110 = vperm.xlu1 %533, %v688_v2   ;;  %154 = vperm.xlu0 %537, %v688_v2  }
  0x2d   :  { %535 = vset.pattern.permute.xlu1 %v625_v11  ;;  %540 = vset.pattern.permute.xlu0 %v626_v12  ;;  %v460_v12 = vld [vmem:[#allocation2 + $0xa] ss:$0 sm:$0xff] }
  0x2e   :  { %132 = vperm.xlu1 %535, %v688_v2   ;;  %187 = vperm.xlu0 %540, %v688_v2  }
  0x32   :  { %536 = vset.pattern.permute.xlu1 %v627_v13  ;;  %543 = vset.pattern.permute.xlu0 %v628_v14  ;;  %v461_v14 = vld [vmem:[#allocation2 + $0xb] ss:$0 sm:$0xff] }
  0x33   :  { %143 = vperm.xlu1 %536, %v688_v2   ;;  %220 = vperm.xlu0 %543, %v688_v2  }
  0x37   :  { %538 = vset.pattern.permute.xlu1 %v629_v15  ;;  %546 = vset.pattern.permute.xlu0 %v630_v16 }
  0x38   :  { %165 = vperm.xlu1 %538, %v688_v2   ;;  %253 = vperm.xlu0 %546, %v688_v2  }
  0x3c   :  { %539 = vset.pattern.permute.xlu1 %v631_v17  ;;  %549 = vset.pattern.permute.xlu0 %v632_v18 }
  0x3d   :  { %176 = vperm.xlu1 %539, %v688_v2   ;;  %286 = vperm.xlu0 %549, %v688_v2  }
  0x41   :  { %541 = vset.pattern.permute.xlu1 %v633_v19  ;;  %552 = vset.pattern.permute.xlu0 %v634_v20  ;;  %v462_v20 = vld [vmem:[#allocation2 + $0xc] ss:$0 sm:$0xff] }
  0x42   :  { %198 = vperm.xlu1 %541, %v688_v2   ;;  %319 = vperm.xlu0 %552, %v688_v2  }
  0x46   :  { %542 = vset.pattern.permute.xlu1 %v635_v21  ;;  %555 = vset.pattern.permute.xlu0 %v636_v22 }
  0x47   :  { %209 = vperm.xlu1 %542, %v688_v2   ;;  %352 = vperm.xlu0 %555, %v688_v2  }
  0x4b   :  { %544 = vset.pattern.permute.xlu1 %v637_v23  ;;  %558 = vset.pattern.permute.xlu0 %v638_v24  ;;  %v463_v24 = vld [vmem:[#allocation2 + $0xd] ss:$0 sm:$0xff] }
  0x4c   :  { %231 = vperm.xlu1 %544, %v688_v2   ;;  %385 = vperm.xlu0 %558, %v688_v2  }
  0x50   :  { %545 = vset.pattern.permute.xlu1 %v639_v25  ;;  %561 = vset.pattern.permute.xlu0 %v640_v26  ;;  %v464_v26 = vld [vmem:[#allocation2 + $0xe] ss:$0 sm:$0xff] }
  0x51   :  { %242 = vperm.xlu1 %545, %v688_v2   ;;  %418 = vperm.xlu0 %561, %v688_v2  }
  0x55   :  { %547 = vset.pattern.permute.xlu1 %v641_v27  ;;  %563 = vset.pattern.permute.xlu0 %v616_v1 }
  0x56   :  { %264 = vperm.xlu1 %547, %v688_v2  }
  0x5a   :  { %548 = vset.pattern.permute.xlu1 %v642_v28 }
  0x5b   :  { %275 = vperm.xlu1 %548, %v688_v2  }
  0x5f   :  { %550 = vset.pattern.permute.xlu1 %v643_v29 }
  0x60   :  { %297 = vperm.xlu1 %550, %v688_v2  }
  0x64   :  { %551 = vset.pattern.permute.xlu1 %v644_v30 }
  0x65   :  { %308 = vperm.xlu1 %551, %v688_v2  }
  0x69   :  { %553 = vset.pattern.permute.xlu1 %v645_v31 }
  0x6a   :  { %330 = vperm.xlu1 %553, %v688_v2  }
  0x6e   :  { %554 = vset.pattern.permute.xlu1 %v646_v32  ;;  %v465_v32 = vld [vmem:[#allocation2 + $0xf] ss:$0 sm:$0xff] }
  0x6f   :  { %341 = vperm.xlu1 %554, %v688_v2  }
  0x73   :  { %556 = vset.pattern.permute.xlu1 %v647_v33 }
  0x74   :  { %363 = vperm.xlu1 %556, %v688_v2  }
  0x78   :  { %557 = vset.pattern.permute.xlu1 %v648_v34 }
  0x79   :  { %374 = vperm.xlu1 %557, %v688_v2  }
  0x7d   :  { %559 = vset.pattern.permute.xlu1 %v649_v35 }
  0x7e   :  { %396 = vperm.xlu1 %559, %v688_v2  }
  0x82   :  { %560 = vset.pattern.permute.xlu1 %v650_v36  ;;  %v466_v36 = vld [vmem:[#allocation2 + $0x10] ss:$0 sm:$0xff] }
  0x83   :  { %407 = vperm.xlu1 %560, %v688_v2   ;;  %v458_v2 = vld [vmem:[#allocation2 + $0x8] ss:$0 sm:$0xff] }
  0x87   :  { %562 = vset.pattern.permute.xlu1 %v616_v1 }
  0x88   :  { %430 = vperm.xlu1 %562, %v427_v37  }
  0x94   :  { %v56_v38 = vpop.permute.xlu1 %55  ;;  %v34_v39 = vpop.permute.xlu0 %33 }
  0x95   :  { %v40_v42 = vmul.f32 %v450_v40, %v34_v39  ;;  %v62_v48 = vmul.f32 %v452_v43, %v56_v38  ;;  %v467_v38 = vld [vmem:[#allocation2 + $0x11] ss:$0 sm:$0xff] }
  0x99   :  { %v67_v44 = vpop.permute.xlu1 %66  ;;  %v45_v45 = vpop.permute.xlu0 %44 }
  0x9a   :  { %v51_v46 = vmul.f32 %v451_v41, %v45_v45  ;;  %v73_v51 = vmul.f32 %v453_v47, %v67_v44  ;;  %v468_v44 = vld [vmem:[#allocation2 + $0x12] ss:$0 sm:$0xff] }
  0x9c   :  { %v52_v49 = vadd.f32 %v51_v46, %v40_v42 }
  0x9e   :  { %v63_v52 = vadd.f32 %v62_v48, %v52_v49  ;;  %v78_v53 = vpop.permute.xlu1 %77  ;;  %v89_v55 = vpop.permute.xlu0 %88  ;;  %v469_v48 = vld [vmem:[#allocation2 + $0x13] ss:$0 sm:$0xff] }
  0x9f   :  { %v84_v56 = vmul.f32 %v454_v50, %v78_v53  ;;  %v95_v58 = vmul.f32 %v455_v54, %v89_v55  ;;  %v470_v50 = vld [vmem:[#allocation2 + $0x14] ss:$0 sm:$0xff] }
  0xa0   :  { %v74_v57 = vadd.f32 %v73_v51, %v63_v52 }
  0xa2   :  { %v85_v59 = vadd.f32 %v84_v56, %v74_v57  ;;  %v471_v56 = vld [vmem:[#allocation2 + $0x15] ss:$0 sm:$0xff] }
  0xa3   :  { %v100_v61 = vpop.permute.xlu1 %99  ;;  %v122_v3 = vpop.permute.xlu0 %121 }
  0xa4   :  { %v96_v62 = vadd.f32 %v95_v58, %v85_v59  ;;  %v106_v63 = vmul.f32 %v456_v60, %v100_v61  ;;  %v128_v7 = vmul.f32 %v458_v2, %v122_v3  ;;  %v472_v60 = vld [vmem:[#allocation2 + $0x16] ss:$0 sm:$0xff] }
  0xa6   :  { %v107_v4 = vadd.f32 %v106_v63, %v96_v62  ;;  %v473_v62 = vld [vmem:[#allocation2 + $0x17] ss:$0 sm:$0xff] }
  0xa8   :  { %v111_v1 = vpop.permute.xlu1 %110  ;;  %v155_v15 = vpop.permute.xlu0 %154 }
  0xa9   :  { %v117_v5 = vmul.f32 %v457_v0, %v111_v1  ;;  %v161_v19 = vmul.f32 %v461_v14, %v155_v15 }
  0xab   :  { %v118_v6 = vadd.f32 %v117_v5, %v107_v4  ;;  %v474_v4 = vld [vmem:[#allocation2 + $0x18] ss:$0 sm:$0xff] }
  0xad   :  { %v133_v9 = vpop.permute.xlu1 %132  ;;  %v129_v10 = vadd.f32 %v128_v7, %v118_v6  ;;  %v188_v27 = vpop.permute.xlu0 %187 }
  0xae   :  { %v139_v11 = vmul.f32 %v459_v8, %v133_v9  ;;  %v194_v31 = vmul.f32 %v464_v26, %v188_v27  ;;  %v475_v8 = vld [vmem:[#allocation2 + $0x19] ss:$0 sm:$0xff] }
  0xb0   :  { %v140_v16 = vadd.f32 %v139_v11, %v129_v10  ;;  %v476_v10 = vld [vmem:[#allocation2 + $0x1a] ss:$0 sm:$0xff] }
  0xb2   :  { %v144_v13 = vpop.permute.xlu1 %143  ;;  %v221_v39 = vpop.permute.xlu0 %220 }
  0xb3   :  { %v150_v17 = vmul.f32 %v460_v12, %v144_v13  ;;  %v227_v43 = vmul.f32 %v467_v38, %v221_v39 }
  0xb5   :  { %v151_v18 = vadd.f32 %v150_v17, %v140_v16  ;;  %v477_v16 = vld [vmem:[#allocation2 + $0x1b] ss:$0 sm:$0xff] }
  0xb7   :  { %v166_v21 = vpop.permute.xlu1 %165  ;;  %v162_v22 = vadd.f32 %v161_v19, %v151_v18  ;;  %v254_v51 = vpop.permute.xlu0 %253 }
  0xb8   :  { %v172_v23 = vmul.f32 %v462_v20, %v166_v21  ;;  %v260_v55 = vmul.f32 %v470_v50, %v254_v51  ;;  %v478_v20 = vld [vmem:[#allocation2 + $0x1c] ss:$0 sm:$0xff] }
  0xba   :  { %v173_v28 = vadd.f32 %v172_v23, %v162_v22  ;;  %v479_v22 = vld [vmem:[#allocation2 + $0x1d] ss:$0 sm:$0xff] }
  0xbc   :  { %v177_v25 = vpop.permute.xlu1 %176  ;;  %v287_v63 = vpop.permute.xlu0 %286 }
  0xbd   :  { %v183_v29 = vmul.f32 %v463_v24, %v177_v25  ;;  %v293_v3 = vmul.f32 %v473_v62, %v287_v63 }
  0xbf   :  { %v184_v30 = vadd.f32 %v183_v29, %v173_v28  ;;  %v480_v28 = vld [vmem:[#allocation2 + $0x1e] ss:$0 sm:$0xff] }
  0xc1   :  { %v199_v33 = vpop.permute.xlu1 %198  ;;  %v195_v34 = vadd.f32 %v194_v31, %v184_v30  ;;  %v320_v11 = vpop.permute.xlu0 %319 }
  0xc2   :  { %v205_v35 = vmul.f32 %v465_v32, %v199_v33  ;;  %v326_v15 = vmul.f32 %v476_v10, %v320_v11  ;;  %v481_v32 = vld [vmem:[#allocation2 + $0x1f] ss:$0 sm:$0xff] }
  0xc4   :  { %v206_v40 = vadd.f32 %v205_v35, %v195_v34  ;;  %v482_v34 = vld [vmem:[#allocation2 + $0x20] ss:$0 sm:$0xff] }
  0xc6   :  { %v210_v37 = vpop.permute.xlu1 %209  ;;  %v353_v23 = vpop.permute.xlu0 %352 }
  0xc7   :  { %v216_v41 = vmul.f32 %v466_v36, %v210_v37  ;;  %v359_v27 = vmul.f32 %v479_v22, %v353_v23 }
  0xc9   :  { %v217_v42 = vadd.f32 %v216_v41, %v206_v40  ;;  %v483_v40 = vld [vmem:[#allocation2 + $0x21] ss:$0 sm:$0xff] }
  0xcb   :  { %v232_v45 = vpop.permute.xlu1 %231  ;;  %v228_v46 = vadd.f32 %v227_v43, %v217_v42  ;;  %v386_v35 = vpop.permute.xlu0 %385 }
  0xcc   :  { %v238_v47 = vmul.f32 %v468_v44, %v232_v45  ;;  %v392_v39 = vmul.f32 %v482_v34, %v386_v35  ;;  %v484_v44 = vld [vmem:[#allocation2 + $0x22] ss:$0 sm:$0xff]  ;;  %v485_v45 = vld [vmem:[#allocation2 + $0x23] ss:$0 sm:$0xff] }
  0xce   :  { %v239_v52 = vadd.f32 %v238_v47, %v228_v46 }
  0xd0   :  { %v243_v49 = vpop.permute.xlu1 %242  ;;  %v419_v46 = vpop.permute.xlu0 %418 }
  0xd1   :  { %v249_v53 = vmul.f32 %v469_v48, %v243_v49  ;;  %v425_v50 = vmul.f32 %v485_v45, %v419_v46 }
  0xd3   :  { %v250_v54 = vadd.f32 %v249_v53, %v239_v52 }
  0xd5   :  { %v265_v57 = vpop.permute.xlu1 %264  ;;  %v261_v58 = vadd.f32 %v260_v55, %v250_v54 }
  0xd6   :  { %v271_v59 = vmul.f32 %v471_v56, %v265_v57 }
  0xd8   :  { %v272_v0 = vadd.f32 %v271_v59, %v261_v58 }
  0xda   :  { %v276_v61 = vpop.permute.xlu1 %275 }
  0xdb   :  { %v282_v1 = vmul.f32 %v472_v60, %v276_v61 }
  0xdd   :  { %v283_v2 = vadd.f32 %v282_v1, %v272_v0 }
  0xdf   :  { %v298_v5 = vpop.permute.xlu1 %297  ;;  %v294_v6 = vadd.f32 %v293_v3, %v283_v2 }
  0xe0   :  { %v304_v7 = vmul.f32 %v474_v4, %v298_v5 }
  0xe2   :  { %v305_v12 = vadd.f32 %v304_v7, %v294_v6 }
  0xe4   :  { %v309_v9 = vpop.permute.xlu1 %308 }
  0xe5   :  { %v315_v13 = vmul.f32 %v475_v8, %v309_v9 }
  0xe7   :  { %v316_v14 = vadd.f32 %v315_v13, %v305_v12 }
  0xe9   :  { %v331_v17 = vpop.permute.xlu1 %330  ;;  %v327_v18 = vadd.f32 %v326_v15, %v316_v14 }
  0xea   :  { %v337_v19 = vmul.f32 %v477_v16, %v331_v17 }
  0xec   :  { %v338_v24 = vadd.f32 %v337_v19, %v327_v18 }
  0xee   :  { %v342_v21 = vpop.permute.xlu1 %341 }
  0xef   :  { %v348_v25 = vmul.f32 %v478_v20, %v342_v21 }
  0xf1   :  { %v349_v26 = vadd.f32 %v348_v25, %v338_v24 }
  0xf3   :  { %v364_v29 = vpop.permute.xlu1 %363  ;;  %v360_v30 = vadd.f32 %v359_v27, %v349_v26 }
  0xf4   :  { %v370_v31 = vmul.f32 %v480_v28, %v364_v29 }
  0xf6   :  { %v371_v36 = vadd.f32 %v370_v31, %v360_v30 }
  0xf8   :  { %v375_v33 = vpop.permute.xlu1 %374 }
  0xf9   :  { %v381_v37 = vmul.f32 %v481_v32, %v375_v33 }
  0xfb   :  { %v382_v38 = vadd.f32 %v381_v37, %v371_v36 }
  0xfd   :  { %v397_v41 = vpop.permute.xlu1 %396  ;;  %v393_v42 = vadd.f32 %v392_v39, %v382_v38 }
  0xfe   :  { %v403_v43 = vmul.f32 %v483_v40, %v397_v41 }
 0x100   :  { %v404_v48 = vadd.f32 %v403_v43, %v393_v42 }
 0x102   :  { %v408_v47 = vpop.permute.xlu1 %407 }
 0x103   :  { %v414_v49 = vmul.f32 %v484_v44, %v408_v47 }
 0x105   :  { %v415_v51 = vadd.f32 %v414_v49, %v404_v48 }
 0x107   :  { %v431_v52 = vpop.permute.xlu1 %430  ;;  %v426_v53 = vadd.f32 %v425_v50, %v415_v51 }
 0x109   :  { %v433_v54 = vadd.f32 %v431_v52, %v426_v53 }
 0x10b   :  { %434 = vst [vmem:[#allocation5] sm:$0xff] %v433_v54 }
 0x10c   :  { %597 = shalt.err (!%p594_p12)
}
 0x10d   :  { %s598_s5 = scalar_lea.hbm %s746_s3, 128 }
 0x10e   :  { %p599_p13 = scmp.ne.s32.totalorder %s746_s3, %s598_s5  ;;  %p602_p0 = scmp.lt.u32.totalorder %s598_s5, %s746_s3 }
 0x110   :  { %p604_p1 = pnand %p602_p0, %p599_p13 }
 0x112   :  { %607 = shalt.err (!%p604_p1)
}
 0x113   :  { %444 = dma.vmem_to_hbm [thread:$0]  %s442_s28, 128, %s746_s3, [#allocation4]  }
 0x114   :  { %610 = dma.done.wait [#allocation4], 128  }
 0x115   :  { %611 = vsyncadd [#allocation4], 4294967168 }
 0x116   :  { %448 = vsyncpa [#allocation3], 1 }
 0x117   :  { %449 = vsyncpa [#allocation4], 1 }

</bundles_post_ra>
